<compile_context>
chip_gen: v5e
topology: v5e:2x2
jax: 0.10.0
libtpu: 0.0.40
codegen_flags: <defaults>
</compile_context>

<pallas_src>
import jax
import jax.numpy as jnp
from jax.experimental import pallas as pl
from jax.experimental.pallas import tpu as pltpu

# BT.601 chroma coefficients (kornia rgb_to_ycbcr convention).
_CB = (-0.168736, -0.331264, 0.5)
_CR = (0.5, -0.418688, -0.081312)

_LANE = 128
_SUBLANE = 8
_MAX_TILE_ROWS = 1024  # 1024*128 f32 = 512 KiB per channel per tile


def _cdiv(a, b):
    return -(-a // b)


def _round_up(a, b):
    return _cdiv(a, b) * b


def _color_loss_kernel(c_ref, g_ref, out_ref):
    """c_ref, g_ref: (3, tile_rows, 128) tiles of one image; out_ref: (8, 128) partial."""
    f32 = jnp.float32
    dr = c_ref[0].astype(f32) - g_ref[0].astype(f32)
    dg = c_ref[1].astype(f32) - g_ref[1].astype(f32)
    db = c_ref[2].astype(f32) - g_ref[2].astype(f32)

    # Diff-first affine projection; the +0.5 chroma offsets cancel.
    d_cb = _CB[0] * dr + _CB[1] * dg + _CB[2] * db
    d_cr = _CR[0] * dr + _CR[1] * dg + _CR[2] * db

    sq = d_cb * d_cb + d_cr * d_cr  # (tile_rows, 128)
    tr = sq.shape[0]
    # (tr,128) -> (tr//8, 8, 128) splits exactly along (8,128) vreg boundaries
    # (free), and the major-axis sum is plain VPU adds — no per-step XLU
    # cross-lane reduction and no masked (1,1) scalar store.
    out_ref[...] = jnp.sum(sq.reshape(tr // _SUBLANE, _SUBLANE, _LANE), axis=0)


def color_similarity_loss(content, generated):
    """content, generated: (B, 3, H, W) RGB images (NCHW), any float/int dtype."""
    assert content.shape == generated.shape
    B, C, H, W = content.shape
    assert C == 3
    HW = H * W

    # Lane-dense tiling of the flattened spatial axis.
    rows = _cdiv(HW, _LANE)
    num_tiles = max(1, _cdiv(rows, _MAX_TILE_ROWS))
    tile_rows = _round_up(_cdiv(rows, num_tiles), _SUBLANE)
    rows_pad = tile_rows * num_tiles
    hw_pad = rows_pad * _LANE

    def _prep(x):
        x = x.reshape(B, 3, HW)
        if hw_pad != HW:
            # Zero padding on both inputs -> zero difference -> no loss impact.
            x = jnp.pad(x, ((0, 0), (0, 0), (0, hw_pad - HW)))
        return x.reshape(B, 3, rows_pad, _LANE)

    img_spec = pl.BlockSpec(
        (pl.Squeezed(), 3, tile_rows, _LANE),
        lambda b, t: (b, 0, t, 0),
    )
    out_spec = pl.BlockSpec(
        (pl.Squeezed(), pl.Squeezed(), _SUBLANE, _LANE),
        lambda b, t: (b, t, 0, 0),
    )

    partials = pl.pallas_call(
        _color_loss_kernel,
        out_shape=jax.ShapeDtypeStruct((B, num_tiles, _SUBLANE, _LANE), jnp.float32),
        grid_spec=pltpu.PrefetchScalarGridSpec(
            num_scalar_prefetch=0,
            grid=(B, num_tiles),
            in_specs=[img_spec, img_spec],
            out_specs=out_spec,
        ),
        compiler_params=pltpu.CompilerParams(
            # Every grid step writes its own output block -> fully parallel
            # (lets both v7x TensorCores drive HBM; harmless on v5e/v6e).
            dimension_semantics=("parallel", "parallel"),
        ),
    )(_prep(content), _prep(generated))

    # Final tiny cross-lane reduce + MSE normalization (over the unpadded
    # (B, 2, H, W) chroma slice, matching nn.MSELoss default 'mean').
    return jnp.sum(partials) / jnp.float32(B * 2 * H * W)


def _reference_loss(content, generated):
    """Pure-JAX reference for correctness checking."""
    def chroma(x):
        r, g, b = x[:, 0], x[:, 1], x[:, 2]
        cb = _CB[0] * r + _CB[1] * g + _CB[2] * b + 0.5
        cr = _CR[0] * r + _CR[1] * g + _CR[2] * b + 0.5
        return jnp.stack([cb, cr], axis=1)

    c = chroma(content.astype(jnp.float32))
    g = chroma(generated.astype(jnp.float32))
    return jnp.mean((c - g) ** 2)


if __name__ == "__main__":
    key = jax.random.PRNGKey(0)
    k1, k2 = jax.random.split(key)
    B, C, H, W = 2, 3, 16, 16  # small RGB images
    content = jax.random.uniform(k1, (B, C, H, W), dtype=jnp.float32)
    generated = jax.random.uniform(k2, (B, C, H, W), dtype=jnp.float32)

    loss = color_similarity_loss(content, generated)
    jax.block_until_ready(loss)

    ref = _reference_loss(content, generated)
    assert jnp.allclose(loss, ref, rtol=1e-5, atol=1e-6), (loss, ref)

    print("KERNEL_OK")
</pallas_src>

<mosaic_0001>
module attributes {stable_mosaic.version = 11 : i64} {
  func.func @_color_loss_kernel(%arg0: i32, %arg1: i32, %arg2: memref<1x3x8x128xf32, #tpu.memory_space<vmem>>, %arg3: memref<1x3x8x128xf32, #tpu.memory_space<vmem>>, %arg4: memref<1x1x8x128xf32, #tpu.memory_space<vmem>>) attributes {dimension_semantics = [#tpu.dimension_semantics<parallel>, #tpu.dimension_semantics<parallel>], iteration_bounds = array<i64: 2, 1>, scalar_prefetch = 0 : i64, scratch_operands = 0 : i64, tpu.core_type = #tpu.core_type<tc>, window_params = [{transform_indices = @transform_0, window_bounds = array<i64: 1, 3, 8, 128>}, {transform_indices = @transform_1, window_bounds = array<i64: 1, 3, 8, 128>}, {transform_indices = @transform_2, window_bounds = array<i64: 1, 1, 8, 128>}]} {
    %c0 = arith.constant 0 : index
    %c0_0 = arith.constant 0 : index
    %c0_1 = arith.constant 0 : index
    %c0_2 = arith.constant 0 : index
    %0 = vector.load %arg2[%c0, %c0_0, %c0_1, %c0_2] : memref<1x3x8x128xf32, #tpu.memory_space<vmem>>, vector<1x1x8x128xf32>
    %1 = vector.shape_cast %0 : vector<1x1x8x128xf32> to vector<8x128xf32>
    %c0_3 = arith.constant 0 : index
    %c0_4 = arith.constant 0 : index
    %c0_5 = arith.constant 0 : index
    %c0_6 = arith.constant 0 : index
    %2 = vector.load %arg3[%c0_3, %c0_4, %c0_5, %c0_6] : memref<1x3x8x128xf32, #tpu.memory_space<vmem>>, vector<1x1x8x128xf32>
    %3 = vector.shape_cast %2 : vector<1x1x8x128xf32> to vector<8x128xf32>
    %4 = arith.subf %1, %3 : vector<8x128xf32>
    %c0_7 = arith.constant 0 : index
    %c1 = arith.constant 1 : index
    %c0_8 = arith.constant 0 : index
    %c0_9 = arith.constant 0 : index
    %5 = vector.load %arg2[%c0_7, %c1, %c0_8, %c0_9] : memref<1x3x8x128xf32, #tpu.memory_space<vmem>>, vector<1x1x8x128xf32>
    %6 = vector.shape_cast %5 : vector<1x1x8x128xf32> to vector<8x128xf32>
    %c0_10 = arith.constant 0 : index
    %c1_11 = arith.constant 1 : index
    %c0_12 = arith.constant 0 : index
    %c0_13 = arith.constant 0 : index
    %7 = vector.load %arg3[%c0_10, %c1_11, %c0_12, %c0_13] : memref<1x3x8x128xf32, #tpu.memory_space<vmem>>, vector<1x1x8x128xf32>
    %8 = vector.shape_cast %7 : vector<1x1x8x128xf32> to vector<8x128xf32>
    %9 = arith.subf %6, %8 : vector<8x128xf32>
    %c0_14 = arith.constant 0 : index
    %c2 = arith.constant 2 : index
    %c0_15 = arith.constant 0 : index
    %c0_16 = arith.constant 0 : index
    %10 = vector.load %arg2[%c0_14, %c2, %c0_15, %c0_16] : memref<1x3x8x128xf32, #tpu.memory_space<vmem>>, vector<1x1x8x128xf32>
    %11 = vector.shape_cast %10 : vector<1x1x8x128xf32> to vector<8x128xf32>
    %c0_17 = arith.constant 0 : index
    %c2_18 = arith.constant 2 : index
    %c0_19 = arith.constant 0 : index
    %c0_20 = arith.constant 0 : index
    %12 = vector.load %arg3[%c0_17, %c2_18, %c0_19, %c0_20] : memref<1x3x8x128xf32, #tpu.memory_space<vmem>>, vector<1x1x8x128xf32>
    %13 = vector.shape_cast %12 : vector<1x1x8x128xf32> to vector<8x128xf32>
    %14 = arith.subf %11, %13 : vector<8x128xf32>
    %cst = arith.constant -1.687360e-01 : f32
    %15 = vector.broadcast %cst : f32 to vector<8x128xf32>
    %16 = arith.mulf %15, %4 : vector<8x128xf32>
    %cst_21 = arith.constant -3.312640e-01 : f32
    %17 = vector.broadcast %cst_21 : f32 to vector<8x128xf32>
    %18 = arith.mulf %17, %9 : vector<8x128xf32>
    %19 = arith.addf %16, %18 : vector<8x128xf32>
    %cst_22 = arith.constant 5.000000e-01 : f32
    %20 = vector.broadcast %cst_22 : f32 to vector<8x128xf32>
    %21 = arith.mulf %20, %14 : vector<8x128xf32>
    %22 = arith.addf %19, %21 : vector<8x128xf32>
    %cst_23 = arith.constant 5.000000e-01 : f32
    %23 = vector.broadcast %cst_23 : f32 to vector<8x128xf32>
    %24 = arith.mulf %23, %4 : vector<8x128xf32>
    %cst_24 = arith.constant -4.186880e-01 : f32
    %25 = vector.broadcast %cst_24 : f32 to vector<8x128xf32>
    %26 = arith.mulf %25, %9 : vector<8x128xf32>
    %27 = arith.addf %24, %26 : vector<8x128xf32>
    %cst_25 = arith.constant -8.131200e-02 : f32
    %28 = vector.broadcast %cst_25 : f32 to vector<8x128xf32>
    %29 = arith.mulf %28, %14 : vector<8x128xf32>
    %30 = arith.addf %27, %29 : vector<8x128xf32>
    %31 = arith.mulf %22, %22 : vector<8x128xf32>
    %32 = arith.mulf %30, %30 : vector<8x128xf32>
    %33 = arith.addf %31, %32 : vector<8x128xf32>
    %34 = vector.shape_cast %33 : vector<8x128xf32> to vector<1x8x128xf32>
    %cst_26 = arith.constant dense<0.000000e+00> : vector<8x128xf32>
    %35 = vector.multi_reduction <add>, %34, %cst_26 [0] : vector<1x8x128xf32> to vector<8x128xf32>
    %c0_27 = arith.constant 0 : index
    %c0_28 = arith.constant 0 : index
    %c0_29 = arith.constant 0 : index
    %c0_30 = arith.constant 0 : index
    %36 = vector.load %arg4[%c0_27, %c0_28, %c0_29, %c0_30] : memref<1x1x8x128xf32, #tpu.memory_space<vmem>>, vector<1x1x8x128xf32>
    %37 = vector.shape_cast %36 : vector<1x1x8x128xf32> to vector<8x128xf32>
    %38 = vector.shape_cast %35 : vector<8x128xf32> to vector<1x1x8x128xf32>
    tpu.vector_store %arg4[%c0_27, %c0_28, %c0_29, %c0_30], %38 {strides = array<i32>} : memref<1x1x8x128xf32, #tpu.memory_space<vmem>>, vector<1x1x8x128xf32>,
    return
  }
  func.func @transform_0(%arg0: i32, %arg1: i32) -> (i32, i32, i32, i32) {
    %c0_i32 = arith.constant 0 : i32
    %c0_i32_0 = arith.constant 0 : i32
    %c0_i32_1 = arith.constant 0 : i32
    return %arg0, %c0_i32, %arg1, %c0_i32_0 : i32, i32, i32, i32
  }
  func.func @transform_1(%arg0: i32, %arg1: i32) -> (i32, i32, i32, i32) {
    %c0_i32 = arith.constant 0 : i32
    %c0_i32_0 = arith.constant 0 : i32
    %c0_i32_1 = arith.constant 0 : i32
    return %arg0, %c0_i32, %arg1, %c0_i32_0 : i32, i32, i32, i32
  }
  func.func @transform_2(%arg0: i32, %arg1: i32) -> (i32, i32, i32, i32) {
    %c0_i32 = arith.constant 0 : i32
    %c0_i32_0 = arith.constant 0 : i32
    %c0_i32_1 = arith.constant 0 : i32
    return %arg0, %arg1, %c0_i32, %c0_i32_0 : i32, i32, i32, i32
  }
}

</mosaic_0001>

<bundles_post_ra>
// kernel: tpu_custom_call.1
= control target key start
LH: loop header
LB: loop body
LE: loop exit
PB: predicated region body
PF: predicated region fallthrough
CT: control target
= control target key end

     0   :  { %7 = vsyncpa [#allocation3], 0  ;;  %s774_s0 = inlined_call_operand.hbm [shape: f32[2,3,8,128], index: 0, kind: input, shape index: {}]   ;;  %s775_s1 = inlined_call_operand.hbm [shape: f32[2,3,8,128], index: 1, kind: input, shape index: {}]   ;;  %s776_s2 = inlined_call_operand.hbm [shape: f32[2,1,8,128], index: 2, kind: output, shape index: {}]  }
   0x1   :  { %9 = vsyncpa [#allocation3 + $0x1], 0 }
   0x2   :  { %10 = vsyncpa [#allocation6], 0 }
   0x3   :  { %12 = vsyncpa [#allocation6 + $0x1], 0 }
   0x4   :  { %13 = vsyncpa [#allocation4], 0 }
   0x5   :  { %15 = vsyncpa [#allocation4 + $0x1], 0  ;;  %s632_s9 = smov 0   ;;  %s634_s10 = smov 0  }
   0x6   :  { %s636_s11 = smov 0   ;;  %s638_s12 = smov 0  }
   0x7   :  { %s640_s13 = smov 0   ;;  %s642_s14 = smov 0  }
   0x8 LB: > { %s377_s15 = sadd.s32 4294967295, %s613_s14   ;;  %s378_s16 = sadd.s32 4294967294, %s613_s14   ;;  %s613_s14 = sphi %s642_s14, %s21_s14   ;;  %s609_s13 = sphi %s640_s13, %s786_s13   ;;  %s605_s12 = sphi %s638_s12, %s785_s12   ;;  %s601_s11 = sphi %s636_s11, %s784_s11   ;;  %s597_s10 = sphi %s634_s10, %s783_s10   ;;  %s593_s9 = sphi %s632_s9, %s782_s9  }
   0x9   : > { %s33_s17 = sadd.s32 1, %s609_s13  ;;  %s42_s18 = sadd.s32 1, %s601_s11 }
   0xa   : > { %p35_p0 = scmp.ge.s32.totalorder %s33_s17, 2  ;;  %p49_p1 = scmp.ne.s32.totalorder %s601_s11, %s597_s10 }
   0xb   : > { %p50_p2 = scmp.eq.s32.totalorder %s613_s14, 0  ;;  %p55_p3 = scmp.ne.s32.totalorder %s597_s10, %s593_s9 }
   0xc   : > { %s788_s17 = smov (%p35_p0, %s33_s17), 0  ;;  %p56_p5 = scmp.eq.s32.totalorder %s377_s15, 0 }
   0xd   : > { %p673_p4 = por %p50_p2, %p49_p1  ;;  %s37_s20 = ssub.s32 %s609_s13, %s788_s17 }
   0xe   : > { %p109_p6 = scmp.eq.s32.totalorder %s377_s15, 1  ;;  %p40_p7 = scmp.eq.s32.totalorder %s37_s20, 0 }
   0xf   : > { %p679_p8 = por %p56_p5, %p55_p3  ;;  %p115_p10 = scmp.eq.s32.totalorder %s378_s16, 1 }
  0x10   : > { %p683_p9 = por %p109_p6, %p49_p1  ;;  %p380_p12 = scmp.ge.s32.totalorder %s613_s14, 2 }
  0x11   : > { %s688_s23 = scalar_select %p40_p7, %s601_s11, %s42_s18  }
  0x12   : > { %p690_p11 = por %p115_p10, %p55_p3  ;;  %p415_p13 = scmp.lt.s32.totalorder %s613_s14, 2 }
  0x13   : > { %s697_s25 = sand.u32 1, %s601_s11   ;;  %s394_s27 = smul.u32 24, %s609_s13 }
  0x14   : > { %s393_s26 = smul.u32 24, %s697_s25  ;;  %p703_p0 = pnand %p415_p13, %p673_p4 }
  0x15   : > { %s145_s3 = scalar_lea.hbm %s774_s0, %s394_s27  ;;  %p383_p1 = scmp.ge.s32.totalorder %s613_s14, 1 }
  0x16   : > { %s139_s4 = scalar_lea.vmem [#allocation2], %s393_s26  ;;  %s146_s6 = sshll.u32 %s145_s3, 4  ;;  %s147_s6 = int_to_ptr.hbm [resolvable:$true] %s146_s6 }
  0x17   : > { %s148_s5 = sshll.u32 %s139_s4, 4  ;;  %s136_s7 = scalar_lea.sflag [#allocation3], %s697_s25  ;;  %s149_s5 = int_to_ptr.vmem [resolvable:$true] %s148_s5 }
  0x18   : > { %s615_s8 = smov 128   ;;  %s616_s15 = smov 8  }
  0x19   : > { %407 = dma.hbm_to_vmem [thread:$0]  (!%p703_p0), %s147_s6, 384, %s149_s5, %s136_s7, %s615_s8, %s615_s8, %s616_s15  }
  0x1a   : > { %p179_p2 = scmp.lt.s32.totalorder %s613_s14, 3  ;;  %s168_s19 = scalar_lea.hbm %s775_s1, %s394_s27 }
  0x1b   : > { %s169_s20 = sshll.u32 %s168_s19, 4  ;;  %s162_s29 = scalar_lea.vmem [#allocation5], %s393_s26  ;;  %s170_s20 = int_to_ptr.hbm [resolvable:$true] %s169_s20 }
  0x1c   : > { %p180_p3 = pnand %p383_p1, %p179_p2  ;;  %s171_s30 = sshll.u32 %s162_s29, 4  ;;  %s172_s30 = int_to_ptr.vmem [resolvable:$true] %s171_s30 }
  0x1d   : > { %s159_s3 = scalar_lea.sflag [#allocation6], %s697_s25  ;;  %s722_s4 = sand.u32 (!%p180_p3), 1, %s597_s10  }
  0x1e   : > { %410 = dma.hbm_to_vmem [thread:$0]  (!%p703_p0), %s170_s20, 384, %s172_s30, %s159_s3, %s615_s8, %s615_s8, %s616_s15  }
  0x1f   : > { %183 = sbr.rel (%p180_p3) target bundleno = 56 (0x38), region = 28  ;;  %s186_s6 = scalar_lea.sflag (!%p180_p3), [#allocation3], %s722_s4 }
  0x20   : > { %s397_s5 = smul.u32 (!%p180_p3), 24, %s722_s4 }
  0x22   : > { %s189_s7 = scalar_lea.vmem (!%p180_p3), [#allocation2], %s397_s5 }
  0x24   : > { %580 = dma.done.wait (%p679_p8), %s186_s6, 384  }
  0x25   : > { %582 = vsyncadd (%p679_p8), %s186_s6, 4294966912  ;;  %s196_s25 = scalar_lea.sflag [#allocation6], %s722_s4  ;;  %s199_s26 = scalar_lea.vmem [#allocation5], %s397_s5 }
  0x26   : > { %584 = dma.done.wait (%p679_p8), %s196_s25, 384  }
  0x27   : > { %586 = vsyncadd (%p679_p8), %s196_s25, 4294966912  ;;  %v226_v0 = vld [vmem:[%s189_s7] sm:$0xff]  ;;  %v227_v1 = vld [vmem:[%s199_s26] sm:$0xff]  ;;  %s384_s27 = sshll.u32 %s722_s4, 3  ;;  %s390_s28 = sshll.u32 %s605_s12, 3 }
  0x28   : > { %v385_v2 = vld [vmem:[%s189_s7 + $0x8] sm:$0xff]  ;;  %v228_v3 = vsub.f32 %v226_v0, %v227_v1  ;;  %v386_v4 = vld [vmem:[%s199_s26 + $0x8] sm:$0xff]  ;;  %v387_v5 = vld [vmem:[%s189_s7 + $0x10] sm:$0xff]  ;;  %s266_s15 = scalar_lea.hbm %s776_s2, %s390_s28  ;;  %s225_s16 = scalar_lea.vmem [#allocation7], %s384_s27 }
  0x29   : > { %v388_v6 = vld [vmem:[%s199_s26 + $0x10] sm:$0xff]  ;;  %v233_v7 = vsub.f32 %v385_v2, %v386_v4  ;;  %s268_s18 = sshll.u32 %s225_s16, 4  ;;  %s270_s19 = sshll.u32 %s266_s15, 4  ;;  %s269_s18 = int_to_ptr.vmem [resolvable:$true] %s268_s18  ;;  %s271_s19 = int_to_ptr.hbm [resolvable:$true] %s270_s19 }
  0x2a   : > { %v238_v8 = vsub.f32 %v387_v5, %v388_v6  ;;  %v239_v9 = vmul.f32 -0.168736, %v228_v3  ;;  %v244_v10 = vmul.f32 0.5, %v228_v3  ;;  %s255_s12 = scalar_lea.sflag [#allocation4], %s722_s4  ;;  %s541_s20 = sshra.s32 %s271_s19, 4  ;;  %s542_s20 = int_to_ptr.hbm [resolvable:$true] %s541_s20 }
  0x2b   : > { %v240_v11 = vmul.f32 -0.331264, %v233_v7  ;;  %v245_v13 = vmul.f32 -0.418688, %v233_v7  ;;  %s543_s29 = scalar_lea.hbm %s542_s20, 8  ;;  %s547_s5 = scalar_lea.hbm %s776_s2, 16 }
  0x2c   : > { %v242_v12 = vmul.f32 0.5, %v238_v8  ;;  %v247_v14 = vmul.f32 -0.081312, %v238_v8  ;;  %p544_p4 = scmp.ne.s32.totalorder %s542_s20, %s543_s29  ;;  %p548_p7 = scmp.lt.s32.totalorder %s542_s20, %s776_s2 }
  0x2d   : > { %v241_v15 = vadd.f32 %v240_v11, %v239_v9  ;;  %v246_v16 = vadd.f32 %v245_v13, %v244_v10  ;;  %p549_p8 = scmp.lt.s32.totalorder %s547_s5, %s543_s29 }
  0x2e   : > { %p545_p5 = pnand %p544_p4, %p683_p9 }
  0x2f   : > { %v243_v17 = vadd.f32 %v242_v12, %v241_v15  ;;  %v248_v18 = vadd.f32 %v247_v14, %v246_v16  ;;  %p550_p10 = por %p549_p8, %p548_p7 }
  0x30   : > { %p546_p6 = pneg %p545_p5 }
  0x31   : > { %v249_v19 = vmul.f32 %v243_v17, %v243_v17  ;;  %v250_v20 = vmul.f32 %v248_v18, %v248_v18 }
  0x32   : > { %p551_p13 = pnand %p550_p10, %p546_p6 }
  0x33   : > { %v251_v21 = vadd.f32 %v250_v20, %v249_v19 }
  0x35   : > { %253 = vst [vmem:[%s225_s16] sm:$0xff] %v251_v21 }
  0x36   : > { %554 = shalt.err (!%p551_p13)
}
  0x37   : > { %402 = dma.vmem_to_hbm [thread:$0]  (%p683_p9), %s269_s18, 128, %s271_s19, %s255_s12  }
  0x38 PF: > { %s282_s4 = sand.u32 1, %s593_s9   ;;  %p412_p0 = pnand %p380_p12, %p690_p11 }
  0x39   : > { %s283_s25 = scalar_lea.sflag [#allocation4], %s282_s4 }
  0x3a   : > { %p413_p1 = pneg %p412_p0 }
  0x3c   : > { %588 = dma.done.wait (%p413_p1), %s283_s25, 128  }
  0x3d   : > { %590 = vsyncadd (%p413_p1), %s283_s25, 4294967168  ;;  %s21_s14 = sadd.s32 1, %s613_s14   ;;  %s782_s9 = smov %s597_s10 }
  0x3e   : > { %p18_p2 = scmp.ge.s32.totalorder %s21_s14, 4   ;;  %s783_s10 = smov %s601_s11 }
  0x3f   : > { %s784_s11 = smov %s688_s23  ;;  %s785_s12 = smov %s609_s13 }
  0x40   : > { %s786_s13 = smov %s788_s17  ;;  %20 = sbr.rel (!%p18_p2) target bundleno = 8 (0x8), region = 90 }
  0x45   :  { %289 = vsyncpa [#allocation3], 1 }
  0x46   :  { %291 = vsyncpa [#allocation3 + $0x1], 1 }
  0x47   :  { %292 = vsyncpa [#allocation6], 1 }
  0x48   :  { %294 = vsyncpa [#allocation6 + $0x1], 1 }
  0x49   :  { %295 = vsyncpa [#allocation4], 1 }
  0x4a   :  { %297 = vsyncpa [#allocation4 + $0x1], 1 }

</bundles_post_ra>
